<compile_context>
chip_gen: v6e
topology: v6e:2x2x1
jax: 0.10.0
libtpu: 0.0.40
codegen_flags: <defaults>
</compile_context>

<pallas_src>
import functools

import jax
import jax.numpy as jnp
from jax.experimental import pallas as pl
from jax.experimental.pallas import tpu as pltpu


# ----------------------------------------------------------------------------
# One-time trace-time check of pltpu.roll's rotation direction (vs jnp.roll),
# so the kernel's lane shifts are correct regardless of the sign convention.
# ----------------------------------------------------------------------------
@functools.lru_cache(maxsize=None)
def _roll_follows_jnp_convention():
    def k(x_ref, o_ref):
        o_ref[...] = pltpu.roll(x_ref[...], shift=1, axis=1)
    x = jnp.arange(8 * 128, dtype=jnp.float32).reshape(8, 128)
    y = pl.pallas_call(k, out_shape=jax.ShapeDtypeStruct((8, 128), jnp.float32))(x)
    return bool(jnp.array_equal(y, jnp.roll(x, 1, axis=1)))


# ----------------------------------------------------------------------------
# Fused stage kernel: all activations stay in vregs/VMEM as (C, H*W) values.
# ----------------------------------------------------------------------------
def _stage_kernel(*refs, num_res, has_init, H, W, roll_is_jnp):
    """refs: x, [w_init, b_init], [w_res, b_res], w_fin, b_fin, out.

      x      : (nb, Cin, H*W)           lane-dense input block (NCHW flattened)
      w_init : (3, C1, 3*Cin)           per-dy flattened 3x3 weights (column = dx*Cin+ci)
      w_res  : (2*num_res, 3, C, 3*C)   stacked ResBlock conv weights
      b_*    : (..., C, 1)
      w_fin  : (Cout, C)                1x1 conv (up-conv / predictor)
      out    : (nb, Cout, H*W)
    """
    it = iter(refs)
    x_ref = next(it)
    w_init_ref = b_init_ref = None
    if has_init:
        w_init_ref, b_init_ref = next(it), next(it)
    w_res_ref = b_res_ref = None
    if num_res > 0:
        w_res_ref, b_res_ref = next(it), next(it)
    w_fin_ref, b_fin_ref = next(it), next(it)
    out_ref = next(it)

    nb = x_ref.shape[0]
    hw = H * W

    # Boundary-validity masks: zero padding of every 3x3 conv is emulated by
    # masking the rolled activation.  Computed once, shared by all convs/images.
    lane = jax.lax.broadcasted_iota(jnp.int32, (1, hw), 1)
    hh = lane // W
    ww = lane % W
    h_ok = (hh >= 1, None, hh <= H - 2)          # dy = 0, 1, 2
    w_ok = (ww >= 1, None, ww <= W - 2)          # dx = 0, 1, 2

    def shifted_tap(act, dy, dx):
        # tap[:, h*W+w] == x_zero_padded[:, h+dy-1, w+dx-1]
        s = (dy - 1) * W + (dx - 1)
        t = act
        if s % hw != 0:
            amt = (-s) % hw if roll_is_jnp else s % hw
            t = pltpu.roll(act, shift=amt, axis=1)     # XLU lane rotation (free slot)
        mh, mw = h_ok[dy], w_ok[dx]
        m = mh if mw is None else (mw if mh is None else jnp.logical_and(mh, mw))
        if m is None:
            return t
        return jnp.where(m, t, 0.0)

    def conv3x3(act, w_dy, bias, residual=None):
        # act: (cin, hw); w_dy[dy]: (cout, 3*cin); bias: (cout, 1)
        acc = None
        for dy in range(3):
            col = jnp.concatenate(
                [shifted_tap(act, dy, dx) for dx in range(3)], axis=0)   # (3*cin, hw)
            part = jnp.dot(w_dy[dy], col, preferred_element_type=jnp.float32)
            acc = part if acc is None else acc + part
        y = acc + bias
        if residual is not None:
            y = y + residual
        return jnp.maximum(y, 0.0)

    for bi in range(nb):
        act = x_ref[bi].astype(jnp.float32)                          # (cin, hw)
        if has_init:
            act = conv3x3(act, [w_init_ref[d] for d in range(3)], b_init_ref[...])
        for k in range(num_res):       # ResBlock: ReLU(conv2(ReLU(conv1(x))) + x)
            y = conv3x3(act, [w_res_ref[2 * k, d] for d in range(3)],
                        b_res_ref[2 * k])
            act = conv3x3(y, [w_res_ref[2 * k + 1, d] for d in range(3)],
                          b_res_ref[2 * k + 1], residual=act)
        # Final 1x1 conv + ReLU (up-conv in stage 1, predictor in stage 2).
        out = jnp.dot(w_fin_ref[...], act, preferred_element_type=jnp.float32)
        out = jnp.maximum(out + b_fin_ref[...], 0.0)
        out_ref[bi] = out.astype(out_ref.dtype)


# ----------------------------------------------------------------------------
# pallas_call wrapper for one stage
# ----------------------------------------------------------------------------
def _const_spec(a):
    nd = a.ndim
    return pl.BlockSpec(a.shape, lambda n, _nd=nd: (0,) * _nd)   # resident weights


def _run_stage(x_flat, weights, out_channels, *, H, W, num_res, has_init,
               images_per_step=1):
    N, cin, hw = x_flat.shape
    nb = images_per_step
    assert hw == H * W and hw % 128 == 0, "flattened spatial dim must be lane-dense"
    assert N % nb == 0
    kernel = functools.partial(
        _stage_kernel, num_res=num_res, has_init=has_init, H=H, W=W,
        roll_is_jnp=_roll_follows_jnp_convention())
    grid_spec = pltpu.PrefetchScalarGridSpec(
        num_scalar_prefetch=0,
        grid=(N // nb,),
        in_specs=([pl.BlockSpec((nb, cin, hw), lambda n: (n, 0, 0))]
                  + [_const_spec(a) for a in weights]),
        out_specs=pl.BlockSpec((nb, out_channels, hw), lambda n: (n, 0, 0)))
    return pl.pallas_call(
        kernel,
        grid_spec=grid_spec,
        out_shape=jax.ShapeDtypeStruct((N, out_channels, hw), jnp.float32),
        compiler_params=pltpu.CompilerParams(
            dimension_semantics=("parallel",)),      # batch across TCs (v7x megacore)
    )(x_flat, *weights)


# ----------------------------------------------------------------------------
# Weight prep (all layout plumbing happens once, outside the kernels)
# ----------------------------------------------------------------------------
def _prep_conv3x3(w_hwio, b):
    # HWIO (3,3,ci,co) -> per-dy matmul weight (3, co, 3*ci); column order = (dx, ci)
    co = w_hwio.shape[-1]
    ci = w_hwio.shape[-2]
    w = jnp.transpose(w_hwio, (0, 3, 1, 2)).reshape(3, co, 3 * ci)
    return w, b.reshape(co, 1)


def _stack_res(res_params):
    ws, bs = zip(*[_prep_conv3x3(w, b) for blk in res_params
                   for (w, b) in ((blk[0], blk[1]), (blk[2], blk[3]))])
    return jnp.stack(ws), jnp.stack(bs)


# ----------------------------------------------------------------------------
# Forward pass (Pallas): two fused pallas_calls + one small XLA PixelShuffle
# ----------------------------------------------------------------------------
def res_pix_shuffle_conv_forward(params, x, r, images_per_step=1):
    """x: dict with 'fused_enc' of shape (N, C, H, W) (NCHW, like PyTorch).
    Returns {'pred': (N, 3, H*r, W*r)}."""
    feat = x["fused_enc"]
    assert feat.ndim == 4
    N, cin, H, W = feat.shape
    x_flat = feat.reshape(N, cin, H * W)               # free reshape; HW is the lane dim

    # ---- stage 1: 3x3 init conv + pre ResBlocks + 1x1 up-conv, fully fused --------
    w0, b0 = _prep_conv3x3(*params["init"])
    stage1 = [w0, b0]
    if params["pre_res"]:
        stage1 += list(_stack_res(params["pre_res"]))
    wu, bu = params["up"]                               # (C1, C2*r*r), (C2*r*r,)
    stage1 += [wu.T, bu.reshape(-1, 1)]
    up_flat = _run_stage(x_flat, stage1, wu.shape[-1], H=H, W=W,
                         num_res=len(params["pre_res"]), has_init=True,
                         images_per_step=images_per_step)

    # ---- PixelShuffle: only inter-stage XLA op (one small reshape+transpose) ------
    # TODO(synk): could be folded into the up-conv weight column order / stage-2
    # input index_map, but one small transpose is not worth the lowering risk here.
    c2 = wu.shape[-1] // (r * r)
    hi = up_flat.reshape(N, c2, r, r, H, W)
    hi = jnp.transpose(hi, (0, 1, 4, 2, 5, 3)).reshape(N, c2, H * r * W * r)

    # ---- stage 2: post ResBlocks + 1x1 predictor, fully fused ----------------------
    stage2 = []
    if params["post_res"]:
        stage2 += list(_stack_res(params["post_res"]))
    wp, bp = params["pred"]                             # (C2, 3), (3,)
    stage2 += [wp.T, bp.reshape(-1, 1)]
    pred_flat = _run_stage(hi, stage2, wp.shape[-1], H=H * r, W=W * r,
                           num_res=len(params["post_res"]), has_init=False,
                           images_per_step=images_per_step)

    return {"pred": pred_flat.reshape(N, 3, H * r, W * r)}   # free reshape, NCHW


# ----------------------------------------------------------------------------
# Parameter init (deterministic, synthetic; HWIO conv layout)
# ----------------------------------------------------------------------------
def _init_conv(key, cin, cout, k):
    kw, kb = jax.random.split(key)
    fan_in = cin * k * k
    w = jax.random.normal(kw, (k, k, cin, cout), jnp.float32) / jnp.sqrt(float(fan_in))
    b = jax.random.normal(kb, (cout,), jnp.float32) * 0.01
    return w, b


def init_params(key, input_dim, init_conv_dim, num_pre, post_conv_dim, num_post, r):
    keys = jax.random.split(key, 3 + 4 * (num_pre + num_post))
    ki = iter(keys)
    params = {}
    params["init"] = _init_conv(next(ki), input_dim, init_conv_dim, 3)
    params["pre_res"] = []
    for _ in range(num_pre):
        w1, b1 = _init_conv(next(ki), init_conv_dim, init_conv_dim, 3)
        w2, b2 = _init_conv(next(ki), init_conv_dim, init_conv_dim, 3)
        params["pre_res"].append((w1, b1, w2, b2))
    wu, bu = _init_conv(next(ki), init_conv_dim, post_conv_dim * r * r, 1)
    params["up"] = (wu[0, 0], bu)                       # (Cin, Cout)
    params["post_res"] = []
    for _ in range(num_post):
        w1, b1 = _init_conv(next(ki), post_conv_dim, post_conv_dim, 3)
        w2, b2 = _init_conv(next(ki), post_conv_dim, post_conv_dim, 3)
        params["post_res"].append((w1, b1, w2, b2))
    wp, bp = _init_conv(next(ki), post_conv_dim, 3, 1)
    params["pred"] = (wp[0, 0], bp)
    return params


# ----------------------------------------------------------------------------
# Pure-JAX reference (NCHW, mirrors the PyTorch module)
# ----------------------------------------------------------------------------
def _ref_conv(x, w_hwio, b, pad, relu):
    y = jax.lax.conv_general_dilated(
        x, w_hwio, window_strides=(1, 1), padding=[(pad, pad), (pad, pad)],
        dimension_numbers=("NCHW", "HWIO", "NCHW"))
    y = y + b.reshape(1, -1, 1, 1)
    return jnp.maximum(y, 0.0) if relu else y


def reference_forward(params, x, r):
    out = x["fused_enc"]
    w, b = params["init"]
    out = _ref_conv(out, w, b, 1, True)
    for (w1, b1, w2, b2) in params["pre_res"]:
        y = _ref_conv(out, w1, b1, 1, True)
        out = jnp.maximum(_ref_conv(y, w2, b2, 1, False) + out, 0.0)
    wu, bu = params["up"]
    out = _ref_conv(out, wu[None, None], bu, 0, True)
    N, C, H, W = out.shape
    c = C // (r * r)
    out = out.reshape(N, c, r, r, H, W)
    out = jnp.transpose(out, (0, 1, 4, 2, 5, 3)).reshape(N, c, H * r, W * r)
    for (w1, b1, w2, b2) in params["post_res"]:
        y = _ref_conv(out, w1, b1, 1, True)
        out = jnp.maximum(_ref_conv(y, w2, b2, 1, False) + out, 0.0)
    wp, bp = params["pred"]
    return _ref_conv(out, wp[None, None], bp, 0, True)


# ----------------------------------------------------------------------------
if __name__ == "__main__":
    # Small, module-consistent config.
    N, input_dim, H, W = 2, 8, 16, 16
    init_conv_dim, post_conv_dim = 16, 16
    num_pre_res_blocks, num_post_res_blocks = 2, 2
    upsample_factor = 2

    key = jax.random.PRNGKey(0)
    k_param, k_data = jax.random.split(key)
    params = init_params(k_param, input_dim, init_conv_dim, num_pre_res_blocks,
                         post_conv_dim, num_post_res_blocks, upsample_factor)
    feat = jax.random.normal(k_data, (N, input_dim, H, W), jnp.float32)

    _ = _roll_follows_jnp_convention()   # resolve roll direction outside jit tracing

    fwd = jax.jit(lambda p, xx: res_pix_shuffle_conv_forward(p, xx, upsample_factor))
    out = fwd(params, {"fused_enc": feat})
    pred = jax.block_until_ready(out["pred"])
    assert pred.shape == (N, 3, H * upsample_factor, W * upsample_factor), pred.shape

    ref = jax.block_until_ready(reference_forward(params, {"fused_enc": feat},
                                                  upsample_factor))
    err = float(jnp.max(jnp.abs(pred - ref)))
    assert err < 1e-3, err

    print("KERNEL_OK")
</pallas_src>

<mosaic_0001>
module attributes {stable_mosaic.version = 11 : i64} {
  func.func @k(%arg0: memref<8x128xf32, #tpu.memory_space<vmem>>, %arg1: memref<8x128xf32, #tpu.memory_space<vmem>>) attributes {dimension_semantics = [], scalar_prefetch = 0 : i64, scratch_operands = 0 : i64, tpu.core_type = #tpu.core_type<tc>} {
    %c0 = arith.constant 0 : index
    %c0_0 = arith.constant 0 : index
    %0 = vector.load %arg0[%c0, %c0_0] : memref<8x128xf32, #tpu.memory_space<vmem>>, vector<8x128xf32>
    %c1_i32 = arith.constant 1 : i32
    %1 = tpu.dynamic_rotate %0 by %c1_i32 dim 1 : vector<8x128xf32>, i32 -> vector<8x128xf32>
    %c0_1 = arith.constant 0 : index
    %c0_2 = arith.constant 0 : index
    %2 = vector.load %arg1[%c0_1, %c0_2] : memref<8x128xf32, #tpu.memory_space<vmem>>, vector<8x128xf32>
    tpu.vector_store %arg1[%c0_1, %c0_2], %1 {strides = array<i32>} : memref<8x128xf32, #tpu.memory_space<vmem>>, vector<8x128xf32>,
    return
  }
}

</mosaic_0001>

<bundles_post_ra>
// kernel: tpu_custom_call.1
= control target key start
LH: loop header
LB: loop body
LE: loop exit
PB: predicated region body
PF: predicated region fallthrough
CT: control target
= control target key end

     0   :  { %6 = vsyncpa [#allocation3], 0  ;;  %s106_s0 = inlined_call_operand.hbm [shape: f32[8,128], index: 0, kind: input, shape index: {}]   ;;  %s107_s1 = inlined_call_operand.hbm [shape: f32[8,128], index: 1, kind: output, shape index: {}]  }
   0x1   :  { %7 = vsyncpa [#allocation4], 0  ;;  %s87_s6 = smov [#allocation2]  }
   0x2   :  { %s14_s7 = sshll.u32 %s87_s6, 4  ;;  %s15_s7 = int_to_ptr.vmem [resolvable:$true] %s14_s7 }
   0x3   :  { %s51_s8 = scalar_lea.vmem %s15_s7, 128  ;;  %p56_p1 = scmp.lt.s32.totalorder %s15_s7, %s15_s7 }
   0x4   :  { %p52_p0 = scmp.ne.s32.totalorder %s15_s7, %s51_s8  ;;  %p57_p2 = scmp.lt.s32.totalorder %s51_s8, %s51_s8 }
   0x6   :  { %p58_p3 = por %p57_p2, %p56_p1 }
   0x8   :  { %p59_p4 = pnand %p58_p3, %p52_p0 }
   0xa   :  { %62 = shalt.err (!%p59_p4)
}
   0xb   :  { %17 = dma.hbm_to_vmem [thread:$0]  %s106_s0, 128, %s15_s7, [#allocation3]  }
   0xc   :  { %83 = dma.done.wait [#allocation3], 128  }
   0xd   :  { %84 = vsyncadd [#allocation3], 4294967168  ;;  %v21_v0 = vld [vmem:[#allocation2] sm:$0xff]  ;;  %s88_s11 = smov 1   ;;  %s89_s12 = smov [#allocation5]  }
   0xe   :  { %22 = vrot.lane.b32.xlu0 %v21_v0, %s88_s11  ;;  %s31_s13 = sshll.u32 %s89_s12, 4  ;;  %s32_s13 = int_to_ptr.vmem [resolvable:$true] %s31_s13 }
   0xf   :  { %s63_s14 = scalar_lea.vmem %s32_s13, 128  ;;  %p68_p6 = scmp.lt.s32.totalorder %s32_s13, %s32_s13 }
  0x10   :  { %p64_p5 = scmp.ne.s32.totalorder %s32_s13, %s63_s14  ;;  %p69_p7 = scmp.lt.s32.totalorder %s63_s14, %s63_s14 }
  0x12   :  { %p70_p8 = por %p69_p7, %p68_p6 }
  0x14   :  { %p71_p9 = pnand %p70_p8, %p64_p5 }
  0x80   :  { %v23_v1 = vpop.permute.xlu0 %22 }
  0x81   :  { %24 = vst [vmem:[#allocation5] sm:$0xff] %v23_v1 }
  0x82   :  { %74 = shalt.err (!%p71_p9)
}
  0x83   :  { %34 = dma.vmem_to_hbm [thread:$0]  %s32_s13, 128, %s107_s1, [#allocation4]  }
  0x84   :  { %85 = dma.done.wait [#allocation4], 128  }
  0x85   :  { %86 = vsyncadd [#allocation4], 4294967168 }
  0x86   :  { %38 = vsyncpa [#allocation3], 1 }
  0x87   :  { %39 = vsyncpa [#allocation4], 1 }

</bundles_post_ra>
